<compile_context>
chip_gen: v7x
topology: tpu7x:2x2x1
jax: 0.10.0
libtpu: 0.0.40
codegen_flags: <defaults>
</compile_context>

<pallas_src>
import jax
import jax.numpy as jnp
from jax.experimental import pallas as pl
from jax.experimental.pallas import tpu as pltpu


def reinforce_kernel(x_ref, w1_ref, b1_ref, w2_ref, b2_ref, out_ref):
    A = out_ref.shape[-1]
    # Layer 1: cast x to bf16 at the MXU boundary, f32 accumulate, bias+ReLU in f32.
    x = x_ref[...].astype(w1_ref.dtype)                      # [TB, S] bf16
    h = jnp.dot(x, w1_ref[...], preferred_element_type=jnp.float32)
    h = jnp.maximum(h + b1_ref[...], 0.0)                    # [TB, H] f32
    # Layer 2: bf16 operands, f32 accumulate.  w2 is zero-padded to 128 lanes
    # purely for a clean MXU tile; drop the padded columns before softmax.
    logits = jnp.dot(h.astype(w2_ref.dtype), w2_ref[...],
                     preferred_element_type=jnp.float32)     # [TB, A_pad] f32
    lg = logits[:, :A] + b2_ref[...]                          # [TB, A] f32
    # Numerically stable softmax over the (tiny) real action dim only.
    m = jnp.max(lg, axis=-1, keepdims=True)
    e = jnp.exp(lg - m)
    denom = jnp.sum(e, axis=-1, keepdims=True)
    out_ref[...] = (e / denom).astype(out_ref.dtype)          # [TB, A] store only real cols


def _round_up(n, m):
    return (n + m - 1) // m * m


def prepare_params(w1, b1, w2, b2, *, lane_pad=128, operand_dtype=jnp.bfloat16):
    """One-time weight prep (hoisted out of the per-call path).

    Weights are stored [in_features, out_features] (== PyTorch W.T), so the
    forward matches nn.Linear exactly.
    """
    S, H = w1.shape
    A = w2.shape[1]
    assert b1.shape == (1, H) and b2.shape == (1, A)
    A_pad = _round_up(A, lane_pad)
    return {
        "w1": w1.astype(operand_dtype),                                   # (S, H)   bf16
        "b1": b1.astype(jnp.float32),                                     # (1, H)   f32
        "w2": jnp.pad(w2, ((0, 0), (0, A_pad - A))).astype(operand_dtype),  # (H, 128) bf16
        "b2": b2.astype(jnp.float32),                                     # (1, A)   f32
    }


def reinforce_forward(x, params, *, tile_b=1024):
    """probs = softmax(relu(x @ w1 + b1) @ w2 + b2, axis=-1)"""
    B, S = x.shape
    w1, b1, w2p, b2 = params["w1"], params["b1"], params["w2"], params["b2"]
    H = w1.shape[1]
    A_pad = w2p.shape[1]
    A = b2.shape[1]
    assert w1.shape == (S, H)

    # Batch tile: large (per-step overhead dominates this tiny MLP), but keep
    # >= 2 grid steps for moderate B so v7x's two TensorCores are both used;
    # keep the row count sublane-aligned (multiple of 8).
    tile_b = min(tile_b, _round_up(pl.cdiv(B, 2), 8))
    tile_b = max(8, _round_up(tile_b, 8))
    grid = (pl.cdiv(B, tile_b),)                      # ragged last block handled by Pallas

    pinned = lambda shape: pl.BlockSpec(shape, lambda i: (0, 0))   # VMEM-resident weights
    return pl.pallas_call(
        reinforce_kernel,
        out_shape=jax.ShapeDtypeStruct((B, A), jnp.float32),
        grid=grid,
        in_specs=[
            pl.BlockSpec((tile_b, S), lambda i: (i, 0)),   # x: f32, tiled over batch
            pinned((S, H)),                                # w1 (bf16)
            pinned((1, H)),                                # b1 (f32)
            pinned((H, A_pad)),                            # w2 (bf16, lane-padded for MXU only)
            pinned((1, A)),                                # b2 (f32, un-padded)
        ],
        out_specs=pl.BlockSpec((tile_b, A), lambda i: (i, 0)),
        compiler_params=pltpu.CompilerParams(
            dimension_semantics=("parallel",)),            # batch rows are independent
    )(x, w1, b1, w2p, b2)


def init_params(key, state_dim, action_dim, hidden_dim=32):
    """Deterministic init mimicking nn.Linear default (uniform +/- 1/sqrt(fan_in))."""
    k1, k2, k3, k4 = jax.random.split(key, 4)
    bound1 = 1.0 / jnp.sqrt(state_dim)
    bound2 = 1.0 / jnp.sqrt(hidden_dim)
    w1 = jax.random.uniform(k1, (state_dim, hidden_dim), jnp.float32, -bound1, bound1)
    b1 = jax.random.uniform(k2, (1, hidden_dim), jnp.float32, -bound1, bound1)
    w2 = jax.random.uniform(k3, (hidden_dim, action_dim), jnp.float32, -bound2, bound2)
    b2 = jax.random.uniform(k4, (1, action_dim), jnp.float32, -bound2, bound2)
    return w1, b1, w2, b2


def _reference(x, w1, b1, w2, b2):
    # Same bf16 operand rounding as the kernel, f32 accumulation / softmax,
    # computed on the un-padded weights.
    bf = lambda a: a.astype(jnp.bfloat16).astype(jnp.float32)
    h = jnp.maximum(bf(x) @ bf(w1) + b1, 0.0)
    logits = bf(h) @ bf(w2) + b2
    return jax.nn.softmax(logits, axis=-1)


if __name__ == "__main__":
    # Small shapes consistent with the module (CartPole-like RL task).
    batch, state_dim, action_dim, hidden_dim = 8, 4, 2, 32

    key = jax.random.PRNGKey(0)
    kx, kp, kx2 = jax.random.split(key, 3)
    x = jax.random.normal(kx, (batch, state_dim), jnp.float32)
    w1, b1, w2, b2 = init_params(kp, state_dim, action_dim, hidden_dim)
    params = prepare_params(w1, b1, w2, b2)

    probs = jax.block_until_ready(reinforce_forward(x, params))
    ref = _reference(x, w1, b1, w2, b2)
    assert probs.shape == (batch, action_dim)
    assert bool(jnp.allclose(probs, ref, atol=2e-3, rtol=2e-3))
    assert bool(jnp.allclose(jnp.sum(probs, axis=-1), 1.0, atol=2e-3))

    # Also exercise the multi-step gridded path (ragged last block, >1 tile).
    x_big = jax.random.normal(kx2, (600, state_dim), jnp.float32)
    probs_big = jax.block_until_ready(
        reinforce_forward(x_big, params, tile_b=256))
    ref_big = _reference(x_big, w1, b1, w2, b2)
    assert probs_big.shape == (600, action_dim)
    assert bool(jnp.allclose(probs_big, ref_big, atol=2e-3, rtol=2e-3))

    print("KERNEL_OK")
</pallas_src>

<mosaic_0001>
module attributes {stable_mosaic.version = 11 : i64} {
  func.func @reinforce_kernel(%arg0: i32, %arg1: memref<8x4xf32, #tpu.memory_space<vmem>>, %arg2: memref<4x32xbf16, #tpu.memory_space<vmem>>, %arg3: memref<1x32xf32, #tpu.memory_space<vmem>>, %arg4: memref<32x128xbf16, #tpu.memory_space<vmem>>, %arg5: memref<1x2xf32, #tpu.memory_space<vmem>>, %arg6: memref<8x2xf32, #tpu.memory_space<vmem>>) attributes {dimension_semantics = [#tpu.dimension_semantics<parallel>], iteration_bounds = array<i64: 1>, scalar_prefetch = 0 : i64, scratch_operands = 0 : i64, tpu.core_type = #tpu.core_type<tc>, window_params = [{transform_indices = @transform_0, window_bounds = array<i64: 8, 4>}, {pipeline_mode = #tpu.pipeline_mode<synchronous>, transform_indices = @transform_1, window_bounds = array<i64: 4, 32>}, {pipeline_mode = #tpu.pipeline_mode<synchronous>, transform_indices = @transform_2, window_bounds = array<i64: 1, 32>}, {pipeline_mode = #tpu.pipeline_mode<synchronous>, transform_indices = @transform_3, window_bounds = array<i64: 32, 128>}, {pipeline_mode = #tpu.pipeline_mode<synchronous>, transform_indices = @transform_4, window_bounds = array<i64: 1, 2>}, {transform_indices = @transform_5, window_bounds = array<i64: 8, 2>}]} {
    %c0 = arith.constant 0 : index
    %c0_0 = arith.constant 0 : index
    %0 = vector.load %arg1[%c0, %c0_0] : memref<8x4xf32, #tpu.memory_space<vmem>>, vector<8x4xf32>
    %1 = arith.truncf %0 : vector<8x4xf32> to vector<8x4xbf16>
    %c0_1 = arith.constant 0 : index
    %c0_2 = arith.constant 0 : index
    %2 = vector.load %arg2[%c0_1, %c0_2] : memref<4x32xbf16, #tpu.memory_space<vmem>>, vector<4x32xbf16>
    %cst = arith.constant dense<0.000000e+00> : vector<8x32xf32>
    %3 = tpu.matmul %1, %2, %cst {dimension_numbers = #tpu.dot_dimension_numbers<[1], [0], [0], [1], [0, 0, 1, 1], [], []>} : vector<8x4xbf16>, vector<4x32xbf16>, vector<8x32xf32> -> vector<8x32xf32>
    %c0_3 = arith.constant 0 : index
    %c0_4 = arith.constant 0 : index
    %4 = vector.load %arg3[%c0_3, %c0_4] : memref<1x32xf32, #tpu.memory_space<vmem>>, vector<1x32xf32>
    %5 = vector.broadcast %4 : vector<1x32xf32> to vector<8x32xf32>
    %6 = arith.addf %3, %5 : vector<8x32xf32>
    %cst_5 = arith.constant 0.000000e+00 : f32
    %7 = vector.broadcast %cst_5 : f32 to vector<8x32xf32>
    %8 = arith.maximumf %6, %7 : vector<8x32xf32>
    %9 = arith.truncf %8 : vector<8x32xf32> to vector<8x32xbf16>
    %c0_6 = arith.constant 0 : index
    %c0_7 = arith.constant 0 : index
    %10 = vector.load %arg4[%c0_6, %c0_7] : memref<32x128xbf16, #tpu.memory_space<vmem>>, vector<32x128xbf16>
    %cst_8 = arith.constant dense<0.000000e+00> : vector<8x128xf32>
    %11 = tpu.matmul %9, %10, %cst_8 {dimension_numbers = #tpu.dot_dimension_numbers<[1], [0], [0], [1], [0, 0, 1, 1], [], []>} : vector<8x32xbf16>, vector<32x128xbf16>, vector<8x128xf32> -> vector<8x128xf32>
    %12 = vector.extract_strided_slice %11 {offsets = [0, 0], sizes = [8, 2], strides = [1, 1]} : vector<8x128xf32> to vector<8x2xf32>
    %c0_9 = arith.constant 0 : index
    %c0_10 = arith.constant 0 : index
    %13 = vector.load %arg5[%c0_9, %c0_10] : memref<1x2xf32, #tpu.memory_space<vmem>>, vector<1x2xf32>
    %14 = vector.broadcast %13 : vector<1x2xf32> to vector<8x2xf32>
    %15 = arith.addf %12, %14 : vector<8x2xf32>
    %cst_11 = arith.constant dense<0xFF800000> : vector<8xf32>
    %16 = vector.multi_reduction <maximumf>, %15, %cst_11 [1] : vector<8x2xf32> to vector<8xf32>
    %17 = vector.shape_cast %16 : vector<8xf32> to vector<8x1xf32>
    %18 = vector.broadcast %17 : vector<8x1xf32> to vector<8x2xf32>
    %19 = arith.subf %15, %18 : vector<8x2xf32>
    %20 = math.exp %19 : vector<8x2xf32>
    %cst_12 = arith.constant dense<0.000000e+00> : vector<8xf32>
    %21 = vector.multi_reduction <add>, %20, %cst_12 [1] : vector<8x2xf32> to vector<8xf32>
    %22 = vector.shape_cast %21 : vector<8xf32> to vector<8x1xf32>
    %23 = vector.broadcast %22 : vector<8x1xf32> to vector<8x2xf32>
    %24 = arith.divf %20, %23 : vector<8x2xf32>
    %c0_13 = arith.constant 0 : index
    %c0_14 = arith.constant 0 : index
    %25 = vector.load %arg6[%c0_13, %c0_14] : memref<8x2xf32, #tpu.memory_space<vmem>>, vector<8x2xf32>
    tpu.vector_store %arg6[%c0_13, %c0_14], %24 {strides = array<i32>} : memref<8x2xf32, #tpu.memory_space<vmem>>, vector<8x2xf32>,
    return
  }
  func.func @transform_0(%arg0: i32) -> (i32, i32) {
    %c0_i32 = arith.constant 0 : i32
    %c0_i32_0 = arith.constant 0 : i32
    return %arg0, %c0_i32 : i32, i32
  }
  func.func @transform_1(%arg0: i32) -> (i32, i32) {
    %c0_i32 = arith.constant 0 : i32
    %c0_i32_0 = arith.constant 0 : i32
    %c0_i32_1 = arith.constant 0 : i32
    return %c0_i32, %c0_i32_0 : i32, i32
  }
  func.func @transform_2(%arg0: i32) -> (i32, i32) {
    %c0_i32 = arith.constant 0 : i32
    %c0_i32_0 = arith.constant 0 : i32
    %c0_i32_1 = arith.constant 0 : i32
    return %c0_i32, %c0_i32_0 : i32, i32
  }
  func.func @transform_3(%arg0: i32) -> (i32, i32) {
    %c0_i32 = arith.constant 0 : i32
    %c0_i32_0 = arith.constant 0 : i32
    %c0_i32_1 = arith.constant 0 : i32
    return %c0_i32, %c0_i32_0 : i32, i32
  }
  func.func @transform_4(%arg0: i32) -> (i32, i32) {
    %c0_i32 = arith.constant 0 : i32
    %c0_i32_0 = arith.constant 0 : i32
    %c0_i32_1 = arith.constant 0 : i32
    return %c0_i32, %c0_i32_0 : i32, i32
  }
  func.func @transform_5(%arg0: i32) -> (i32, i32) {
    %c0_i32 = arith.constant 0 : i32
    %c0_i32_0 = arith.constant 0 : i32
    return %arg0, %c0_i32 : i32, i32
  }
}

</mosaic_0001>

<bundles_post_ra>
// kernel: tpu_custom_call.1
= control target key start
LH: loop header
LB: loop body
LE: loop exit
PB: predicated region body
PF: predicated region fallthrough
CT: control target
= control target key end

     0   :  { %vm35_vm0 = vcmask 1041408   ;;  %v199_v0 = vmov 0.0   ;;  %vm200_vm1 = vmmov 0   ;;  %vm31_vm2 = vcmask 31744   ;;  %s255_s1 = inlined_call_operand.vmem [shape: bf16[4,32], index: 1, kind: input, shape index: {}]   ;;  %s256_s0 = inlined_call_operand.vmem [shape: f32[8,4], index: 0, kind: input, shape index: {}]   ;;  %s257_s3 = inlined_call_operand.vmem [shape: bf16[32,128], index: 3, kind: input, shape index: {}]   ;;  %s258_s2 = inlined_call_operand.vmem [shape: f32[1,32], index: 2, kind: input, shape index: {}]   ;;  %s259_s4 = inlined_call_operand.vmem [shape: f32[1,2], index: 4, kind: input, shape index: {}]   ;;  %s260_s5 = inlined_call_operand.vmem [shape: f32[8,2], index: 5, kind: output, shape index: {}]  }
   0x1   :  { %177 = vmatprep.subr.bf16.mxu0 %v199_v0  ;;  %v23_v1 = vld [vmem:[%s255_s1] sm:$0x3]  ;;  %179 = vmatprep.mubr.msk.bf16.mxu0 %vm200_vm1, %v199_v0  ;;  %v194_v6 = vld [vmem:[%s257_s3 + $0x8] sm:$0xff]   ;;  %vm97_vm3 = vcmask 261120   ;;  %vm149_vm4 = vcmask 15360  }
   0x2   :  { %v21_v2 = vld [vmem:[%s256_s0] sm:$0xff]  ;;  %v37_v3 = vsel %vm35_vm0, %v23_v1, 0  ;;  %183 = vmatprep.subr.bf16.mxu1 %v199_v0  ;;  %187 = vmatprep.mubr.msk.bf16.mxu1 %vm200_vm1, %v199_v0 }
   0x3   :  { %v22_v4 = vpack.c.bf16 %v21_v2, %v21_v2  ;;  %178 = vmatpush3.bf16.msra.mxu0 %v37_v3  ;;  %v193_v5 = vld [vmem:[%s257_s3] sm:$0xff]  }
   0x4   :  { %184 = vmatpush3.bf16.msra.mxu1 %v193_v5  ;;  %v166_v7 = vld [vmem:[%s258_s2] ss:$0 sm:$0xff] }
   0x5   :  { %185 = vmatprep.subr.bf16.mxu1 %v199_v0  ;;  %v171_v15 = vld [vmem:[%s259_s4] ss:$0 sm:$0xff] }
   0x6   :  { %180 = vmatmul.mubr.msk.bf16.vlgmr.msra.gmra.mrb[0].mxu0 %vm31_vm2, %v22_v4 }
   0x8   :  { %186 = vmatpush3.bf16.msra.mxu1 %v194_v6 }
  0xd9   :  { %v73_v8 = vpop.f32.mrb[0].mxu0 }
  0xda   :  { %v74_v9 = vadd.f32 %v166_v7, %v73_v8  ;;  %v181_v10 = vpop.f32.mrb[1].mxu0 }
  0xdb   :  { %v76_v11 = vpop.f32.mrb[2].mxu0 }
  0xdc   :  { %v79_v12 = vmax.f32 %v74_v9, 0.0  ;;  %v182_v13 = vpop.f32.mrb[3].mxu0 }
  0xde   :  { %v80_v14 = vpack.c.bf16 %v79_v12, %v79_v12 }
  0xe0   :  { %188 = vmatmul.mubr.msk.bf16.vlgmr.msra.gmra.mrb[0].mxu1 %vm97_vm3, %v80_v14 }
 0x1b3   :  { %v135_v16 = vpop.f32.mrb[0].mxu1 }
 0x1b4   :  { %v148_v17 = vadd.f32 %v171_v15, %v135_v16  ;;  %v189_v18 = vpop.f32.mrb[1].mxu1 }
 0x1b5   :  { %v138_v19 = vpop.f32.mrb[2].mxu1 }
 0x1b6   :  { %v190_v20 = vpop.f32.mrb[3].mxu1  ;;  %v150_v21 = vsel %vm149_vm4, %v148_v17, -inf }
 0x1b7   :  { %151 = vmax.xlane.f32.xlu0 %v150_v21 }
 0x244   :  { %v152_v22 = vpop.xlane.xlu0 %151 }
 0x245   :  { %v153_v23 = vsub.f32 %v148_v17, %v152_v22 }
 0x247   :  { %v154_v24 = vmul.f32 1.442695, %v153_v23 }
 0x249   :  { %195 = vpow2.f32 %v154_v24 }
 0x253   :  { %v196_v25 = vpop.eup %195 }
 0x254   :  { %v156_v26 = vsel %vm149_vm4, %v196_v25, 0.0 }
 0x255   :  { %157 = vadd.xlane.f32.xlu0 %v156_v26 }
 0x2e2   :  { %v158_v27 = vpop.xlane.xlu0 %157 }
 0x2e3   :  { %197 = vrcp.f32 %v158_v27 }
 0x2ed   :  { %v198_v28 = vpop.eup %197 }
 0x2ee   :  { %v160_v29 = vmul.f32 %v198_v28, %v196_v25 }
 0x2f0   :  { %161 = vst.msk [vmem:[%s260_s5] sm:$0xff] %vm149_vm4, %v160_v29 }

</bundles_post_ra>
